<compile_context>
chip_gen: v7x
topology: tpu7x:2x2x1
jax: 0.10.0
libtpu: 0.0.40
codegen_flags: <defaults>
</compile_context>

<pallas_src>
import functools

import jax
import jax.numpy as jnp
from jax import lax
from jax.experimental import pallas as pl
from jax.experimental.pallas import tpu as pltpu


_VMEM_LIMIT = 64 * 1024 * 1024  # fits physical VMEM on v5e/v6e/v7x


def _pick_tile(dim, target):
    """Largest power-of-two tile <= target that divides dim (else full dim)."""
    for t in (target, 512, 256, 128, 64, 32, 16, 8):
        if t <= target and t <= dim and dim % t == 0:
            return t
    return dim


# ---------------------------------------------------------------------------
# Tiled linear projection:  y = x @ w.T   (w kept in nn.Linear (out, in) layout)
# ---------------------------------------------------------------------------
def _linear_kernel(x_ref, w_ref, o_ref, acc_ref):
    @pl.when(pl.program_id(2) == 0)
    def _():
        acc_ref[...] = jnp.zeros(acc_ref.shape, acc_ref.dtype)

    # x tile: (tm, tk); w tile: (tn, tk)  -> contract K, accumulate in f32.
    acc_ref[...] += jnp.dot(
        x_ref[...], w_ref[...].T, preferred_element_type=jnp.float32
    )

    @pl.when(pl.program_id(2) == pl.num_programs(2) - 1)
    def _():
        o_ref[...] = acc_ref[...].astype(o_ref.dtype)


def pallas_linear(x, w, *, block_m=256, block_n=256, block_k=512):
    """x: (M, K), w: (N, K) -> (M, N) = x @ w.T without transposing w in HBM."""
    M, K = x.shape
    N, Kw = w.shape
    assert K == Kw
    tm = _pick_tile(M, block_m)
    tn = _pick_tile(N, block_n)
    tk = _pick_tile(K, block_k)
    grid = (M // tm, N // tn, K // tk)
    return pl.pallas_call(
        _linear_kernel,
        out_shape=jax.ShapeDtypeStruct((M, N), x.dtype),
        grid_spec=pltpu.PrefetchScalarGridSpec(
            num_scalar_prefetch=0,
            grid=grid,
            in_specs=[
                pl.BlockSpec((tm, tk), lambda i, j, kk: (i, kk)),
                pl.BlockSpec((tn, tk), lambda i, j, kk: (j, kk)),
            ],
            out_specs=pl.BlockSpec((tm, tn), lambda i, j, kk: (i, j)),
            scratch_shapes=[pltpu.VMEM((tm, tn), jnp.float32)],
        ),
        compiler_params=pltpu.CompilerParams(
            dimension_semantics=("parallel", "parallel", "arbitrary"),
            vmem_limit_bytes=_VMEM_LIMIT,
        ),
    )(x, w)


# ---------------------------------------------------------------------------
# Flash-style causal grouped-query attention kernel
# ---------------------------------------------------------------------------
def _flash_gqa_kernel(
    q_ref, k_ref, v_ref, o_ref, m_ref, l_ref, acc_ref,
    *, scale, heads_per_group, block_q, block_kv,
):
    qi = pl.program_id(2)
    ki = pl.program_id(3)

    @pl.when(ki == 0)
    def _():
        m_ref[...] = jnp.full(m_ref.shape, -jnp.inf, m_ref.dtype)
        l_ref[...] = jnp.zeros(l_ref.shape, l_ref.dtype)
        acc_ref[...] = jnp.zeros(acc_ref.shape, acc_ref.dtype)

    def online_update(diagonal):
        k = k_ref[0, 0]  # (TKV, D)
        v = v_ref[0, 0]  # (TKV, D)
        if diagonal:
            # Causal mask built only for the diagonal tile from a broadcast
            # compare (no full (TQ,TKV) int32 iotas).  block_q == block_kv and
            # qi == ki here, so the global condition reduces to row >= col.
            row = lax.broadcasted_iota(jnp.int32, (block_q, 1), 0)
            col = lax.broadcasted_iota(jnp.int32, (1, block_kv), 1)
            causal = row >= col
        for j in range(heads_per_group):
            # Fold the softmax scale into Q (TQ*D mults instead of TQ*TKV).
            q = (q_ref[0, j] * scale).astype(q_ref.dtype)  # (TQ, D)
            s = jnp.dot(q, k.T, preferred_element_type=jnp.float32)  # (TQ,TKV)
            if diagonal:
                s = jnp.where(causal, s, jnp.float32(-1e30))
            m_prev = m_ref[j]                                         # (TQ, 1)
            m_new = jnp.maximum(m_prev, jnp.max(s, axis=-1, keepdims=True))
            alpha = jnp.exp(m_prev - m_new)
            p = jnp.exp(s - m_new)
            l_ref[j] = alpha * l_ref[j] + jnp.sum(p, axis=-1, keepdims=True)
            acc_ref[j] = alpha * acc_ref[j] + jnp.dot(
                p.astype(v.dtype), v, preferred_element_type=jnp.float32
            )
            m_ref[j] = m_new

    @pl.when(ki < qi)       # strictly-below-diagonal tiles: no mask needed
    def _():
        online_update(diagonal=False)

    @pl.when(ki == qi)      # diagonal tile: apply the causal mask
    def _():
        online_update(diagonal=True)

    # Tiles with ki > qi are fully masked: compute is skipped entirely and
    # their DMA is elided (the kv index_map clamps to min(ki, qi)).

    @pl.when(ki == pl.num_programs(3) - 1)
    def _():
        # EUP reciprocal keeps the divide off the VALU slots.
        inv_l = pl.reciprocal(l_ref[...], approx=True)  # (hpg, TQ, 1)
        # TODO(synk): for D < 128 the store is lane-sparse; packing hpg heads
        # into an (TQ, hpg*D) output slab would make it lane-dense.
        o_ref[0] = (acc_ref[...] * inv_l).astype(o_ref.dtype)


def pallas_flash_gqa_attention(q, k, v, softmax_scale, *, block=256):
    """Causal grouped-query attention.  q: (B,H,S,D), k/v: (B,G,S,D)."""
    B, H, S, D = q.shape
    G = k.shape[1]
    assert H % G == 0
    hpg = H // G
    blk = _pick_tile(S, block)   # TQ == TKV (required by the diagonal logic)
    n_tiles = S // blk

    kernel = functools.partial(
        _flash_gqa_kernel,
        scale=float(softmax_scale),
        heads_per_group=hpg,
        block_q=blk,
        block_kv=blk,
    )

    q_spec = pl.BlockSpec((1, hpg, blk, D), lambda b, g, qi, ki: (b, g, qi, 0))
    # Clamp the kv tile index so fully-masked steps re-use the previous block
    # (Pallas skips the DMA when the block index does not change).
    kv_spec = pl.BlockSpec(
        (1, 1, blk, D), lambda b, g, qi, ki: (b, g, jnp.minimum(ki, qi), 0)
    )
    o_spec = pl.BlockSpec((1, hpg, blk, D), lambda b, g, qi, ki: (b, g, qi, 0))

    return pl.pallas_call(
        kernel,
        out_shape=jax.ShapeDtypeStruct((B, H, S, D), q.dtype),
        grid_spec=pltpu.PrefetchScalarGridSpec(
            num_scalar_prefetch=0,
            grid=(B, G, n_tiles, n_tiles),
            in_specs=[q_spec, kv_spec, kv_spec],
            out_specs=o_spec,
            scratch_shapes=[
                pltpu.VMEM((hpg, blk, 1), jnp.float32),   # running max m
                pltpu.VMEM((hpg, blk, 1), jnp.float32),   # running sum l
                pltpu.VMEM((hpg, blk, D), jnp.float32),   # output accumulator
            ],
        ),
        compiler_params=pltpu.CompilerParams(
            dimension_semantics=("parallel", "parallel", "parallel", "arbitrary"),
            vmem_limit_bytes=_VMEM_LIMIT,
        ),
    )(q, k, v)


# ---------------------------------------------------------------------------
# MultiQueryAttention forward (glue in plain JAX, hot paths in Pallas)
# ---------------------------------------------------------------------------
def multi_query_attention_forward(x, wqkv, wo, *, num_heads, num_groups):
    """
    x:    (seqlen, bsz, hidden)                      -- matches the torch module
    wqkv: (hidden + 2*head_dim*num_groups, hidden)   -- nn.Linear weight (out, in)
    wo:   (hidden, hidden)
    returns: (seqlen, bsz, hidden)
    """
    S, B, dim = x.shape
    assert dim % num_heads == 0 and num_heads % num_groups == 0
    head_dim = dim // num_heads

    # wqkv projection: y = x @ W.T, weight consumed in (out, in) layout.
    x_flat = x.reshape(S * B, dim)
    xqkv = pallas_linear(x_flat, wqkv)            # (S*B, dim + 2*head_dim*G)

    xq = xqkv[:, :dim].reshape(S, B, num_heads, head_dim)
    xkv = xqkv[:, dim:].reshape(S, B, num_groups, 2 * head_dim)
    xk = xkv[..., :head_dim]
    xv = xkv[..., head_dim:]

    # TODO(synk): these 's b h d' -> 'b h s d' transposes (and the one back)
    # still run as XLA HBM passes; they could be folded into the attention
    # BlockSpecs with an (S, B, H, D) index_map.
    q = jnp.transpose(xq, (1, 2, 0, 3))           # (B, H, S, D)
    k = jnp.transpose(xk, (1, 2, 0, 3))           # (B, G, S, D)
    v = jnp.transpose(xv, (1, 2, 0, 3))           # (B, G, S, D)

    softmax_scale = float(head_dim) ** -0.5
    out = pallas_flash_gqa_attention(q, k, v, softmax_scale)  # (B, H, S, D)

    # 'b h s d' -> 's b (h d)'
    out = jnp.transpose(out, (2, 0, 1, 3)).reshape(S * B, dim)

    # wo projection
    out = pallas_linear(out, wo).reshape(S, B, dim)
    return out


# ---------------------------------------------------------------------------
# Pure-JAX reference (same math, no Pallas) for a sanity check
# ---------------------------------------------------------------------------
def _reference_forward(x, wqkv, wo, *, num_heads, num_groups):
    S, B, dim = x.shape
    head_dim = dim // num_heads
    xqkv = x @ wqkv.T
    xq = xqkv[..., :dim].reshape(S, B, num_heads, head_dim)
    xkv = xqkv[..., dim:].reshape(S, B, num_groups, 2 * head_dim)
    xk, xv = xkv[..., :head_dim], xkv[..., head_dim:]
    q = jnp.transpose(xq, (1, 2, 0, 3))
    k = jnp.transpose(xk, (1, 2, 0, 3))
    v = jnp.transpose(xv, (1, 2, 0, 3))
    hpg = num_heads // num_groups
    k = jnp.repeat(k, hpg, axis=1)
    v = jnp.repeat(v, hpg, axis=1)
    scale = float(head_dim) ** -0.5
    s = jnp.einsum("bhqd,bhkd->bhqk", q, k) * scale
    mask = jnp.tril(jnp.ones((S, S), dtype=bool))
    s = jnp.where(mask[None, None], s, -1e30)
    p = jax.nn.softmax(s, axis=-1)
    o = jnp.einsum("bhqk,bhkd->bhqd", p, v)
    o = jnp.transpose(o, (2, 0, 1, 3)).reshape(S, B, dim)
    return o @ wo.T


if __name__ == "__main__":
    # Small config consistent with the module
    seqlen = 16
    bsz = 2
    hidden = 32
    num_heads = 4
    num_groups = 2
    head_dim = hidden // num_heads  # 8

    key = jax.random.PRNGKey(0)
    kx, kqkv, ko = jax.random.split(key, 3)

    x = jax.random.normal(kx, (seqlen, bsz, hidden), dtype=jnp.float32)
    wqkv = 0.02 * jax.random.normal(
        kqkv, (hidden + 2 * head_dim * num_groups, hidden), dtype=jnp.float32
    )
    wo = 0.02 * jax.random.normal(ko, (hidden, hidden), dtype=jnp.float32)

    out = multi_query_attention_forward(
        x, wqkv, wo, num_heads=num_heads, num_groups=num_groups
    )
    out = jax.block_until_ready(out)

    ref = _reference_forward(x, wqkv, wo, num_heads=num_heads, num_groups=num_groups)
    assert out.shape == (seqlen, bsz, hidden)
    assert jnp.allclose(out, ref, atol=1e-3, rtol=1e-3), float(
        jnp.max(jnp.abs(out - ref))
    )

    print("KERNEL_OK")
</pallas_src>

<mosaic_0001>
module attributes {stable_mosaic.version = 11 : i64} {
  func.func @_linear_kernel(%arg0: i32, %arg1: i32, %arg2: i32, %arg3: memref<32x32xf32, #tpu.memory_space<vmem>>, %arg4: memref<64x32xf32, #tpu.memory_space<vmem>>, %arg5: memref<32x64xf32, #tpu.memory_space<vmem>>, %arg6: memref<32x64xf32, #tpu.memory_space<vmem>>) attributes {dimension_semantics = [#tpu.dimension_semantics<parallel>, #tpu.dimension_semantics<parallel>, #tpu.dimension_semantics<arbitrary>], iteration_bounds = array<i64: 1, 1, 1>, scalar_prefetch = 0 : i64, scratch_operands = 1 : i64, tpu.core_type = #tpu.core_type<tc>, window_params = [{transform_indices = @transform_0, window_bounds = array<i64: 32, 32>}, {transform_indices = @transform_1, window_bounds = array<i64: 64, 32>}, {transform_indices = @transform_2, window_bounds = array<i64: 32, 64>}]} {
    %c0_i32 = arith.constant 0 : i32
    %0 = arith.cmpi eq, %arg2, %c0_i32 : i32
    %1 = arith.extui %0 : i1 to i32
    %c0_i32_0 = arith.constant 0 : i32
    %2 = arith.cmpi ne, %1, %c0_i32_0 : i32
    scf.if %2 {
      %cst_10 = arith.constant 0.000000e+00 : f32
      %13 = vector.broadcast %cst_10 : f32 to vector<32x64xf32>
      %c0_11 = arith.constant 0 : index
      %c0_12 = arith.constant 0 : index
      %14 = vector.load %arg6[%c0_11, %c0_12] : memref<32x64xf32, #tpu.memory_space<vmem>>, vector<32x64xf32>
      tpu.vector_store %arg6[%c0_11, %c0_12], %13 {strides = array<i32>} : memref<32x64xf32, #tpu.memory_space<vmem>>, vector<32x64xf32>,
    } else {
    }
    %c0 = arith.constant 0 : index
    %c0_1 = arith.constant 0 : index
    %3 = vector.load %arg6[%c0, %c0_1] : memref<32x64xf32, #tpu.memory_space<vmem>>, vector<32x64xf32>
    %c0_2 = arith.constant 0 : index
    %c0_3 = arith.constant 0 : index
    %4 = vector.load %arg3[%c0_2, %c0_3] : memref<32x32xf32, #tpu.memory_space<vmem>>, vector<32x32xf32>
    %c0_4 = arith.constant 0 : index
    %c0_5 = arith.constant 0 : index
    %5 = vector.load %arg4[%c0_4, %c0_5] : memref<64x32xf32, #tpu.memory_space<vmem>>, vector<64x32xf32>
    %6 = tpu.transpose %5, [1, 0] : vector<64x32xf32> -> vector<32x64xf32>
    %cst = arith.constant dense<0.000000e+00> : vector<32x64xf32>
    %7 = tpu.matmul %4, %6, %cst {dimension_numbers = #tpu.dot_dimension_numbers<[1], [0], [0], [1], [0, 0, 1, 1], [], []>} : vector<32x32xf32>, vector<32x64xf32>, vector<32x64xf32> -> vector<32x64xf32>
    %8 = arith.addf %3, %7 : vector<32x64xf32>
    %c0_6 = arith.constant 0 : index
    %c0_7 = arith.constant 0 : index
    %9 = vector.load %arg6[%c0_6, %c0_7] : memref<32x64xf32, #tpu.memory_space<vmem>>, vector<32x64xf32>
    tpu.vector_store %arg6[%c0_6, %c0_7], %8 {strides = array<i32>} : memref<32x64xf32, #tpu.memory_space<vmem>>, vector<32x64xf32>,
    %c0_i32_8 = arith.constant 0 : i32
    %10 = arith.cmpi eq, %arg2, %c0_i32_8 : i32
    %11 = arith.extui %10 : i1 to i32
    %c0_i32_9 = arith.constant 0 : i32
    %12 = arith.cmpi ne, %11, %c0_i32_9 : i32
    scf.if %12 {
      %c0_10 = arith.constant 0 : index
      %c0_11 = arith.constant 0 : index
      %13 = vector.load %arg6[%c0_10, %c0_11] : memref<32x64xf32, #tpu.memory_space<vmem>>, vector<32x64xf32>
      %c0_12 = arith.constant 0 : index
      %c0_13 = arith.constant 0 : index
      %14 = vector.load %arg5[%c0_12, %c0_13] : memref<32x64xf32, #tpu.memory_space<vmem>>, vector<32x64xf32>
      tpu.vector_store %arg5[%c0_12, %c0_13], %13 {strides = array<i32>} : memref<32x64xf32, #tpu.memory_space<vmem>>, vector<32x64xf32>,
    } else {
    }
    return
  }
  func.func @transform_0(%arg0: i32, %arg1: i32, %arg2: i32) -> (i32, i32) {
    %c0_i32 = arith.constant 0 : i32
    return %arg0, %arg2 : i32, i32
  }
  func.func @transform_1(%arg0: i32, %arg1: i32, %arg2: i32) -> (i32, i32) {
    %c0_i32 = arith.constant 0 : i32
    return %arg1, %arg2 : i32, i32
  }
  func.func @transform_2(%arg0: i32, %arg1: i32, %arg2: i32) -> (i32, i32) {
    %c0_i32 = arith.constant 0 : i32
    return %arg0, %arg1 : i32, i32
  }
}

</mosaic_0001>

<bundles_post_ra>
// kernel: tpu_custom_call.1
= control target key start
LH: loop header
LB: loop body
LE: loop exit
PB: predicated region body
PF: predicated region fallthrough
CT: control target
= control target key end

     0   :  { %7 = vsyncpa [#allocation4], 0  ;;  %s501_s0 = inlined_call_operand.hbm [shape: f32[32,32], index: 0, kind: input, shape index: {}]   ;;  %s502_s1 = inlined_call_operand.hbm [shape: f32[64,32], index: 1, kind: input, shape index: {}]   ;;  %s503_s2 = inlined_call_operand.hbm [shape: f32[32,64], index: 2, kind: output, shape index: {}]  }
   0x1   :  { %8 = vsyncpa [#allocation7], 0 }
   0x2   :  { %9 = vsyncpa [#allocation5], 0  ;;  %s381_s9 = smov [#allocation3]   ;;  %s309_s13 = scalar_lea.hbm %s501_s0, 512 }
   0x3   :  { %s15_s10 = sshll.u32 %s381_s9, 4  ;;  %p310_p0 = scmp.ne.s32.totalorder %s501_s0, %s309_s13  ;;  %s16_s10 = int_to_ptr.vmem [resolvable:$true] %s15_s10 }
   0x4   :  { %p313_p1 = scmp.lt.u32.totalorder %s309_s13, %s501_s0 }
   0x6   :  { %p315_p2 = pnand %p313_p1, %p310_p0 }
   0x8   :  { %318 = shalt.err (!%p315_p2)
}
   0x9   :  { %s319_s18 = scalar_lea.vmem %s16_s10, 512  ;;  %p324_p4 = scmp.lt.s32.totalorder %s16_s10, %s16_s10 }
   0xa   :  { %p320_p3 = scmp.ne.s32.totalorder %s16_s10, %s319_s18  ;;  %p325_p5 = scmp.lt.s32.totalorder %s319_s18, %s319_s18 }
   0xc   :  { %p326_p6 = por %p325_p5, %p324_p4 }
   0xe   :  { %p327_p7 = pnand %p326_p6, %p320_p3 }
  0x10   :  { %330 = shalt.err (!%p327_p7)
}
  0x11   :  { %s382_s19 = smov 128   ;;  %s383_s20 = smov 8  }
  0x12   :  { %21 = dma.hbm_to_vmem [thread:$0]  %s501_s0, 512, %s16_s10, [#allocation4], %s382_s19, %s382_s19, %s383_s20  }
  0x13   :  { %s384_s23 = smov [#allocation6]   ;;  %s331_s27 = scalar_lea.hbm %s502_s1, 1024 }
  0x14   :  { %s27_s24 = sshll.u32 %s384_s23, 4  ;;  %p332_p8 = scmp.ne.s32.totalorder %s502_s1, %s331_s27  ;;  %s28_s24 = int_to_ptr.vmem [resolvable:$true] %s27_s24 }
  0x15   :  { %p335_p9 = scmp.lt.u32.totalorder %s331_s27, %s502_s1 }
  0x17   :  { %p337_p10 = pnand %p335_p9, %p332_p8 }
  0x19   :  { %340 = shalt.err (!%p337_p10)
}
  0x1a   :  { %s341_s4 = scalar_lea.vmem %s28_s24, 1024  ;;  %p346_p12 = scmp.lt.s32.totalorder %s28_s24, %s28_s24 }
  0x1b   :  { %p342_p11 = scmp.ne.s32.totalorder %s28_s24, %s341_s4  ;;  %p347_p13 = scmp.lt.s32.totalorder %s341_s4, %s341_s4 }
  0x1d   :  { %p348_p0 = por %p347_p13, %p346_p12 }
  0x1f   :  { %p349_p1 = pnand %p348_p0, %p342_p11 }
  0x21   :  { %352 = shalt.err (!%p349_p1)
}
  0x22   :  { %33 = dma.hbm_to_vmem [thread:$0]  %s502_s1, 1024, %s28_s24, [#allocation7], %s382_s19, %s382_s19, %s383_s20  }
  0x23   :  { %375 = dma.done.wait [#allocation4], 512  }
  0x24   :  { %376 = vsyncadd [#allocation4], 4294966784 }
  0x25   :  { %377 = dma.done.wait [#allocation7], 1024  }
  0x26   :  { %378 = vsyncadd [#allocation7], 4294966272  ;;  %vm44_vm0 = vcmask 523264   ;;  %v385_v0 = vmov 0.0   ;;  %vm65_vm1 = vcmask 261120   ;;  %v57_v2 = vld [vmem:[#allocation6] sm:$0xff] }
  0x27   :  { %46 = vst.msk [vmem:[#allocation2 + $0x8] sm:$0xff] %vm44_vm0, %v385_v0  ;;  %45 = vst.msk [vmem:[#allocation2] sm:$0xff] %vm44_vm0, %v385_v0  ;;  %v58_v3 = vld [vmem:[#allocation6 + $0x8] sm:$0xff]  ;;  %v59_v4 = vld [vmem:[#allocation6 + $0x10] sm:$0xff]  ;;  %s386_s1 = smov [#allocation8]  }
  0x28   :  { %47 = vst.msk [vmem:[#allocation2 + $0x10] sm:$0xff] %vm44_vm0, %v385_v0  ;;  %48 = vst.msk [vmem:[#allocation2 + $0x18] sm:$0xff] %vm44_vm0, %v385_v0  ;;  %v271_v5 = vpack.c.bf16 %v58_v3, %v57_v2  ;;  %v60_v6 = vld [vmem:[#allocation6 + $0x18] sm:$0xff]  ;;  %v53_v8 = vld [vmem:[#allocation3] sm:$0xff]  ;;  %s212_s6 = sshll.u32 %s386_s1, 4  ;;  %s213_s6 = int_to_ptr.vmem [resolvable:$true] %s212_s6 }
  0x29   :  { %vm438_vm2 = vmpackc.low %vm65_vm1, %vm65_vm1  ;;  %v277_v7 = vpack.c.bf16 %v60_v6, %v59_v4  ;;  %v55_v9 = vld [vmem:[#allocation3 + $0x10] sm:$0xff]  ;;  %v61_v10 = vld [vmem:[#allocation6 + $0x20] sm:$0xff]  ;;  %265 = vmatprep.mubr.msk.f32.mxu0 %vm65_vm1, %v53_v8  ;;  %s353_s7 = scalar_lea.vmem %s213_s6, 512  ;;  %p358_p3 = scmp.lt.s32.totalorder %s213_s6, %s213_s6 }
  0x2a   :  { %273 = vmatprep.subr.msk.bf16.mxu0 %vm438_vm2, %v271_v5  ;;  %295 = vmatprep.subr.msk.bf16.mxu1 %vm438_vm2, %v271_v5  ;;  %v62_v11 = vld [vmem:[#allocation6 + $0x28] sm:$0xff]  ;;  %v63_v13 = vld [vmem:[#allocation6 + $0x30] sm:$0xff]  ;;  %v64_v14 = vld [vmem:[#allocation6 + $0x38] sm:$0xff]  ;;  %p354_p2 = scmp.ne.s32.totalorder %s213_s6, %s353_s7  ;;  %p359_p4 = scmp.lt.s32.totalorder %s353_s7, %s353_s7 }
  0x2b   :  { %276 = vmatpush3.bf16.xpose.msk.msra.mxu0 %vm438_vm2, %v271_v5  ;;  %299 = vmatpush3.bf16.xpose.msk.msra.mxu1 %vm438_vm2, %v271_v5  ;;  %v283_v12 = vpack.c.bf16 %v62_v11, %v61_v10  ;;  %v289_v15 = vpack.c.bf16 %v64_v14, %v63_v13  ;;  %v54_v16 = vld [vmem:[#allocation3 + $0x8] sm:$0xff]  ;;  %v56_v17 = vld [vmem:[#allocation3 + $0x18] sm:$0xff] }
  0x2c   :  { %279 = vmatprep.subr.msk.bf16.mxu0 %vm438_vm2, %v277_v7  ;;  %296 = vmatprep.subr.msk.bf16.mxu1 %vm438_vm2, %v277_v7  ;;  %p360_p5 = por %p359_p4, %p358_p3 }
  0x2d   :  { %268 = vmatprep.mubr.msk.f32.mxu1 %vm65_vm1, %v55_v9 }
  0x2e   :  { %v50_v18 = vld [vmem:[#allocation2 + $0x8] sm:$0xff]  ;;  %v49_v20 = vld [vmem:[#allocation2] sm:$0xff]  ;;  %p361_p6 = pnand %p360_p5, %p354_p2 }
  0x2f   :  { %v52_v19 = vld [vmem:[#allocation2 + $0x18] sm:$0xff]  ;;  %v51_v21 = vld [vmem:[#allocation2 + $0x10] sm:$0xff] }
  0x33   :  { %282 = vmatpush3.bf16.xpose.msk.msra.mxu0 %vm438_vm2, %v277_v7  ;;  %300 = vmatpush3.bf16.xpose.msk.msra.mxu1 %vm438_vm2, %v277_v7 }
  0x34   :  { %285 = vmatprep.subr.msk.bf16.mxu0 %vm438_vm2, %v283_v12  ;;  %297 = vmatprep.subr.msk.bf16.mxu1 %vm438_vm2, %v283_v12 }
  0x3b   :  { %288 = vmatpush3.bf16.xpose.msk.msra.mxu0 %vm438_vm2, %v283_v12  ;;  %301 = vmatpush3.bf16.xpose.msk.msra.mxu1 %vm438_vm2, %v283_v12 }
  0x3c   :  { %291 = vmatprep.subr.msk.bf16.mxu0 %vm438_vm2, %v289_v15  ;;  %298 = vmatprep.subr.msk.bf16.mxu1 %vm438_vm2, %v289_v15 }
  0x43   :  { %294 = vmatpush3.bf16.xpose.msk.msra.mxu0 %vm438_vm2, %v289_v15  ;;  %302 = vmatpush3.bf16.xpose.msk.msra.mxu1 %vm438_vm2, %v289_v15 }
  0x4a   :  { %266 = vmatmul.mubr.msk.f32.vlgmr.msra.gmra.mrb[0].mxu0 %vm65_vm1, %v54_v16  ;;  %269 = vmatmul.mubr.msk.f32.vlgmr.msra.gmra.mrb[0].mxu1 %vm65_vm1, %v56_v17 }
 0x11d   :  { %v267_v22 = vpop.f32.mrb[0].mxu0  ;;  %v270_v23 = vpop.f32.mrb[0].mxu1 }
 0x11e   :  { %v188_v24 = vadd.f32 %v267_v22, %v50_v18  ;;  %v190_v25 = vadd.f32 %v270_v23, %v52_v19  ;;  %v168_v26 = vpop.f32.mrb[1].mxu0  ;;  %v178_v27 = vpop.f32.mrb[1].mxu1 }
 0x11f   :  { %v187_v28 = vadd.f32 %v168_v26, %v49_v20  ;;  %v189_v29 = vadd.f32 %v178_v27, %v51_v21 }
 0x120   :  { %193 = vst.msk [vmem:[#allocation2 + $0x8] sm:$0xff] %vm44_vm0, %v188_v24  ;;  %195 = vst.msk [vmem:[#allocation2 + $0x18] sm:$0xff] %vm44_vm0, %v190_v25 }
 0x121   :  { %192 = vst.msk [vmem:[#allocation2] sm:$0xff] %vm44_vm0, %v187_v28  ;;  %194 = vst.msk [vmem:[#allocation2 + $0x10] sm:$0xff] %vm44_vm0, %v189_v29 }
 0x127   :  { %v200_v30 = vld [vmem:[#allocation2 + $0x8] sm:$0xff]  ;;  %v202_v31 = vld [vmem:[#allocation2 + $0x18] sm:$0xff] }
 0x128   :  { %v199_v32 = vld [vmem:[#allocation2] sm:$0xff]  ;;  %v201_v33 = vld [vmem:[#allocation2 + $0x10] sm:$0xff]  ;;  %204 = vst.msk [vmem:[#allocation8 + $0x8] sm:$0xff] %vm44_vm0, %v200_v30  ;;  %206 = vst.msk [vmem:[#allocation8 + $0x18] sm:$0xff] %vm44_vm0, %v202_v31 }
 0x129   :  { %203 = vst.msk [vmem:[#allocation8] sm:$0xff] %vm44_vm0, %v199_v32  ;;  %205 = vst.msk [vmem:[#allocation8 + $0x10] sm:$0xff] %vm44_vm0, %v201_v33 }
 0x12a   :  { %364 = shalt.err (!%p361_p6)
}
 0x12b   :  { %s365_s10 = scalar_lea.hbm %s503_s2, 512 }
 0x12c   :  { %p366_p7 = scmp.ne.s32.totalorder %s503_s2, %s365_s10  ;;  %p369_p8 = scmp.lt.u32.totalorder %s365_s10, %s503_s2 }
 0x12e   :  { %p371_p9 = pnand %p369_p8, %p366_p7 }
 0x130   :  { %374 = shalt.err (!%p371_p9)
}
 0x131   :  { %218 = dma.vmem_to_hbm [thread:$0]  %s213_s6, 512, %s503_s2, [#allocation5], %s382_s19, %s382_s19, %s383_s20  }
 0x132   :  { %379 = dma.done.wait [#allocation5], 512  }
 0x133   :  { %380 = vsyncadd [#allocation5], 4294966784 }
 0x134   :  { %222 = vsyncpa [#allocation4], 1 }
 0x135   :  { %223 = vsyncpa [#allocation7], 1 }
 0x136   :  { %224 = vsyncpa [#allocation5], 1 }

</bundles_post_ra>
